<compile_context>
chip_gen: v7x
topology: tpu7x:2x2x1
jax: 0.10.0
libtpu: 0.0.40
codegen_flags: <defaults>
</compile_context>

<pallas_src>
import functools

import numpy as np
import jax
import jax.numpy as jnp
from jax.experimental import pallas as pl
from jax.experimental.pallas import tpu as pltpu

_LANES = 128
_SUBLANES = 8
_NUM_CORE_SPLITS = 2  # use both TensorCores on v7x; harmless loop on v5e/v6e


def _clamp_l1_sum_kernel(x_ref, t_ref, out_ref, *, max_val):
    """Accumulates the per-element clamped-L1 loss into a (1, 8, 128) partial-sum
    block that stays resident across the inner ("arbitrary") grid axis."""
    i = pl.program_id(1)

    @pl.when(i == 0)
    def _():
        out_ref[...] = jnp.zeros_like(out_ref)

    # Upcast in-register (inputs may be bf16); loss math in f32.
    x = x_ref[...].astype(jnp.float32)          # (tile_r, 128)
    t = t_ref[...].astype(jnp.float32)          # (tile_r, 128)

    # ClampMSELoss elementwise math (padding zeros contribute 0 in both branches).
    l1 = jnp.abs(x - t)
    clamped = jnp.maximum(max_val - x, 0.0)
    loss = jnp.where(t < max_val, l1, clamped)

    # VPU-only partial reduction: collapse sublane-groups onto one (8, 128) vreg.
    r = loss.shape[0]
    partial = loss.reshape(r // _SUBLANES, _SUBLANES, _LANES).sum(axis=0)
    out_ref[...] += partial.reshape(1, _SUBLANES, _LANES)


def clamp_l1_loss_mean(input_, target, *, max_val=10.0, max_tile_rows=4096):
    """Pallas implementation of ClampMSELoss(max=max_val, loss=L1Loss,
    reduction='mean').forward(input, target). Returns a scalar."""
    assert input_.shape == target.shape
    n = int(np.prod(input_.shape))
    assert n > 0

    # Lane-dense layout: flatten -> (rows, 128).
    rows = -(-n // _LANES)

    # Tile selection: split rows across the parallel axis, then pick the number
    # of steps first and size the tile to it, so padding waste stays tiny even
    # for large inputs while tiles stay near max_tile_rows.
    per_core = -(-rows // _NUM_CORE_SPLITS)
    per_core = -(-per_core // _SUBLANES) * _SUBLANES
    steps = max(1, -(-per_core // max_tile_rows))
    tile_r = -(-per_core // steps)
    tile_r = -(-tile_r // _SUBLANES) * _SUBLANES
    rows_padded = _NUM_CORE_SPLITS * steps * tile_r
    total = rows_padded * _LANES

    # Keep the native dtype (bf16 stays bf16 -> half the HBM bytes); only pad
    # when the tiling does not already fit exactly.
    x = jnp.ravel(input_)
    t = jnp.ravel(target)
    pad = total - n
    if pad:
        # TODO(synk): for very large, badly-sized inputs a separate tail call
        # would avoid this full padded copy; bounded-waste tiling keeps it cheap.
        x = jnp.pad(x, (0, pad))
        t = jnp.pad(t, (0, pad))
    x = x.reshape(rows_padded, _LANES)
    t = t.reshape(rows_padded, _LANES)

    kernel = functools.partial(_clamp_l1_sum_kernel, max_val=float(max_val))

    partials = pl.pallas_call(
        kernel,
        out_shape=jax.ShapeDtypeStruct((_NUM_CORE_SPLITS, _SUBLANES, _LANES),
                                       jnp.float32),
        grid_spec=pltpu.PrefetchScalarGridSpec(
            num_scalar_prefetch=0,
            grid=(_NUM_CORE_SPLITS, steps),
            in_specs=[
                pl.BlockSpec((tile_r, _LANES), lambda c, i: (c * steps + i, 0)),
                pl.BlockSpec((tile_r, _LANES), lambda c, i: (c * steps + i, 0)),
            ],
            out_specs=pl.BlockSpec((1, _SUBLANES, _LANES),
                                   lambda c, i: (c, 0, 0)),
        ),
        compiler_params=pltpu.CompilerParams(
            dimension_semantics=("parallel", "arbitrary"),
            vmem_limit_bytes=32 * 1024 * 1024),
    )(x, t)

    # Tiny final reduce (2*8*128 f32) + scale by precomputed reciprocal.
    return jnp.sum(partials) * (1.0 / n)


def clamp_l1_loss_mean_ref(input_, target, *, max_val=10.0):
    """Pure-JAX reference mirroring the PyTorch module (L1Loss, mean)."""
    loss = jnp.where(target < max_val,
                     jnp.abs(input_ - target),
                     jax.nn.relu(max_val - input_))
    return jnp.mean(loss)


# TODO(synk): reduction='none' (returning the full elementwise loss tensor) and
# arbitrary user-supplied `loss=` callables are not implemented in-kernel; this
# covers the module defaults (L1Loss, reduction='mean').

if __name__ == "__main__":
    # Small shapes: batch=2, channels=4, spatial=16x16.
    B, C, H, W = 2, 4, 16, 16
    key = jax.random.PRNGKey(0)
    k1, k2 = jax.random.split(key)
    # Spread target around max=10 so both branches of the `where` are exercised.
    inp = jax.random.normal(k1, (B, C, H, W), dtype=jnp.float32) * 4.0 + 5.0
    tgt = jax.random.normal(k2, (B, C, H, W), dtype=jnp.float32) * 3.0 + 10.0

    out = clamp_l1_loss_mean(inp, tgt, max_val=10.0)
    out = jax.block_until_ready(out)

    ref = jax.block_until_ready(clamp_l1_loss_mean_ref(inp, tgt, max_val=10.0))

    np.testing.assert_allclose(np.asarray(out), np.asarray(ref),
                               rtol=1e-5, atol=1e-6)
    print("KERNEL_OK")
</pallas_src>

<mosaic_0001>
module attributes {stable_mosaic.version = 11 : i64} {
  func.func @_clamp_l1_sum_kernel(%arg0: i32, %arg1: i32, %arg2: memref<8x128xf32, #tpu.memory_space<vmem>>, %arg3: memref<8x128xf32, #tpu.memory_space<vmem>>, %arg4: memref<1x8x128xf32, #tpu.memory_space<vmem>>) attributes {dimension_semantics = [#tpu.dimension_semantics<parallel>, #tpu.dimension_semantics<arbitrary>], iteration_bounds = array<i64: 2, 1>, scalar_prefetch = 0 : i64, scratch_operands = 0 : i64, tpu.core_type = #tpu.core_type<tc>, window_params = [{transform_indices = @transform_0, window_bounds = array<i64: 8, 128>}, {transform_indices = @transform_1, window_bounds = array<i64: 8, 128>}, {transform_indices = @transform_2, window_bounds = array<i64: 1, 8, 128>}]} {
    %c0_i32 = arith.constant 0 : i32
    %0 = arith.cmpi eq, %arg1, %c0_i32 : i32
    %1 = arith.extui %0 : i1 to i32
    %c0_i32_0 = arith.constant 0 : i32
    %2 = arith.cmpi ne, %1, %c0_i32_0 : i32
    scf.if %2 {
      %cst_13 = arith.constant 0.000000e+00 : f32
      %20 = vector.broadcast %cst_13 : f32 to vector<1x8x128xf32>
      %c0_14 = arith.constant 0 : index
      %c0_15 = arith.constant 0 : index
      %c0_16 = arith.constant 0 : index
      %21 = vector.load %arg4[%c0_14, %c0_15, %c0_16] : memref<1x8x128xf32, #tpu.memory_space<vmem>>, vector<1x8x128xf32>
      tpu.vector_store %arg4[%c0_14, %c0_15, %c0_16], %20 {strides = array<i32>} : memref<1x8x128xf32, #tpu.memory_space<vmem>>, vector<1x8x128xf32>,
    } else {
    }
    %c0 = arith.constant 0 : index
    %c0_1 = arith.constant 0 : index
    %3 = vector.load %arg2[%c0, %c0_1] : memref<8x128xf32, #tpu.memory_space<vmem>>, vector<8x128xf32>
    %c0_2 = arith.constant 0 : index
    %c0_3 = arith.constant 0 : index
    %4 = vector.load %arg3[%c0_2, %c0_3] : memref<8x128xf32, #tpu.memory_space<vmem>>, vector<8x128xf32>
    %5 = arith.subf %3, %4 : vector<8x128xf32>
    %6 = math.absf %5 : vector<8x128xf32>
    %cst = arith.constant 1.000000e+01 : f32
    %7 = vector.broadcast %cst : f32 to vector<8x128xf32>
    %8 = arith.subf %7, %3 : vector<8x128xf32>
    %cst_4 = arith.constant 0.000000e+00 : f32
    %9 = vector.broadcast %cst_4 : f32 to vector<8x128xf32>
    %10 = arith.maximumf %8, %9 : vector<8x128xf32>
    %cst_5 = arith.constant 1.000000e+01 : f32
    %11 = vector.broadcast %cst_5 : f32 to vector<8x128xf32>
    %12 = arith.cmpf olt, %4, %11 : vector<8x128xf32>
    %13 = arith.select %12, %6, %10 : vector<8x128xi1>, vector<8x128xf32>
    %14 = vector.shape_cast %13 : vector<8x128xf32> to vector<1x8x128xf32>
    %cst_6 = arith.constant dense<0.000000e+00> : vector<8x128xf32>
    %15 = vector.multi_reduction <add>, %14, %cst_6 [0] : vector<1x8x128xf32> to vector<8x128xf32>
    %c0_7 = arith.constant 0 : index
    %c0_8 = arith.constant 0 : index
    %c0_9 = arith.constant 0 : index
    %16 = vector.load %arg4[%c0_7, %c0_8, %c0_9] : memref<1x8x128xf32, #tpu.memory_space<vmem>>, vector<1x8x128xf32>
    %17 = vector.shape_cast %15 : vector<8x128xf32> to vector<1x8x128xf32>
    %18 = arith.addf %16, %17 : vector<1x8x128xf32>
    %c0_10 = arith.constant 0 : index
    %c0_11 = arith.constant 0 : index
    %c0_12 = arith.constant 0 : index
    %19 = vector.load %arg4[%c0_10, %c0_11, %c0_12] : memref<1x8x128xf32, #tpu.memory_space<vmem>>, vector<1x8x128xf32>
    tpu.vector_store %arg4[%c0_10, %c0_11, %c0_12], %18 {strides = array<i32>} : memref<1x8x128xf32, #tpu.memory_space<vmem>>, vector<1x8x128xf32>,
    return
  }
  func.func @transform_0(%arg0: i32, %arg1: i32) -> (i32, i32) {
    %c1_i32 = arith.constant 1 : i32
    %0 = arith.muli %arg0, %c1_i32 : i32
    %1 = arith.addi %0, %arg1 : i32
    %c0_i32 = arith.constant 0 : i32
    %c0_i32_0 = arith.constant 0 : i32
    return %1, %c0_i32 : i32, i32
  }
  func.func @transform_1(%arg0: i32, %arg1: i32) -> (i32, i32) {
    %c1_i32 = arith.constant 1 : i32
    %0 = arith.muli %arg0, %c1_i32 : i32
    %1 = arith.addi %0, %arg1 : i32
    %c0_i32 = arith.constant 0 : i32
    %c0_i32_0 = arith.constant 0 : i32
    return %1, %c0_i32 : i32, i32
  }
  func.func @transform_2(%arg0: i32, %arg1: i32) -> (i32, i32, i32) {
    %c0_i32 = arith.constant 0 : i32
    %c0_i32_0 = arith.constant 0 : i32
    %c0_i32_1 = arith.constant 0 : i32
    return %arg0, %c0_i32, %c0_i32_0 : i32, i32, i32
  }
}

</mosaic_0001>

<bundles_post_ra>
// kernel: tpu_custom_call.1
= control target key start
LH: loop header
LB: loop body
LE: loop exit
PB: predicated region body
PF: predicated region fallthrough
CT: control target
= control target key end

     0   :  { %7 = vsyncpa [#allocation3], 0  ;;  %s820_s0 = inlined_call_operand.hbm [shape: f32[16,128], index: 0, kind: input, shape index: {}]   ;;  %s821_s1 = inlined_call_operand.hbm [shape: f32[16,128], index: 1, kind: input, shape index: {}]   ;;  %s822_s2 = inlined_call_operand.hbm [shape: f32[2,8,128], index: 2, kind: output, shape index: {}]  }
   0x1   :  { %9 = vsyncpa [#allocation3 + $0x1], 0 }
   0x2   :  { %10 = vsyncpa [#allocation6], 0 }
   0x3   :  { %12 = vsyncpa [#allocation6 + $0x1], 0 }
   0x4   :  { %13 = vsyncpa [#allocation4], 0 }
   0x5   :  { %15 = vsyncpa [#allocation4 + $0x1], 0  ;;  %s600_s9 = smov 0   ;;  %s602_s10 = smov 0  }
   0x6   :  { %s604_s11 = smov 0   ;;  %s606_s12 = smov 0  }
   0x7   :  { %s608_s13 = smov 0   ;;  %s610_s14 = smov 0  }
   0x8 LB: > { %s350_s15 = sadd.s32 4294967295, %s580_s14   ;;  %s351_s16 = sadd.s32 4294967294, %s580_s14   ;;  %s580_s14 = sphi %s610_s14, %s21_s14   ;;  %s576_s13 = sphi %s608_s13, %s842_s13   ;;  %s572_s12 = sphi %s606_s12, %s841_s12   ;;  %s568_s11 = sphi %s604_s11, %s840_s11   ;;  %s564_s10 = sphi %s602_s10, %s839_s10   ;;  %s560_s9 = sphi %s600_s9, %s838_s9  }
   0x9   : > { %s33_s17 = sadd.s32 1, %s576_s13  ;;  %s42_s18 = sadd.s32 1, %s568_s11 }
   0xa   : > { %p35_p0 = scmp.ge.s32.totalorder %s33_s17, 2  ;;  %p49_p1 = scmp.ne.s32.totalorder %s568_s11, %s564_s10 }
   0xb   : > { %p50_p2 = scmp.eq.s32.totalorder %s580_s14, 0  ;;  %p55_p3 = scmp.ne.s32.totalorder %s564_s10, %s560_s9 }
   0xc   : > { %s844_s17 = smov (%p35_p0, %s33_s17), 0  ;;  %p56_p5 = scmp.eq.s32.totalorder %s350_s15, 0 }
   0xd   : > { %p641_p4 = por %p50_p2, %p49_p1  ;;  %s39_s20 = ssub.s32 %s576_s13, %s844_s17 }
   0xe   : > { %p107_p6 = scmp.eq.s32.totalorder %s350_s15, 1  ;;  %p40_p7 = scmp.eq.s32.totalorder %s39_s20, 0 }
   0xf   : > { %p647_p8 = por %p56_p5, %p55_p3  ;;  %p113_p10 = scmp.eq.s32.totalorder %s351_s16, 1 }
  0x10   : > { %p651_p9 = por %p107_p6, %p49_p1  ;;  %p383_p13 = scmp.lt.s32.totalorder %s580_s14, 2 }
  0x11   : > { %s826_s21 = scalar_select %p647_p8, 1, 0 }
  0x12   : > { %s827_s22 = scalar_select %p651_p9, 1, 0 }
  0x13   : > { %s656_s23 = scalar_select %p40_p7, %s568_s11, %s42_s18  }
  0x14   : > { %p658_p11 = por %p113_p10, %p55_p3  ;;  %s665_s25 = sand.u32 1, %s568_s11  }
  0x15   : > { %s354_s26 = sshll.u32 %s665_s25, 3  ;;  %s355_s27 = sshll.u32 %s576_s13, 7 }
  0x16   : > { %s828_s24 = scalar_select %p658_p11, 1, 0 }
  0x17   : > { %s674_s30 = scalar_lea.hbm %s820_s0, %s355_s27  ;;  %s137_s3 = scalar_lea.vmem [#allocation2], %s354_s26 }
  0x18   : > { %s145_s4 = sshll.u32 %s137_s3, 4  ;;  %p682_p0 = pnand %p383_p13, %p641_p4  ;;  %s678_s4 = int_to_ptr.vmem [resolvable:$true] %s145_s4 }
  0x19   : > { %s134_s6 = scalar_lea.sflag [#allocation3], %s665_s25  ;;  %s434_s7 = scalar_lea.hbm %s674_s30, 128 }
  0x1a   : > { %p435_p3 = scmp.ne.s32.totalorder %s674_s30, %s434_s7  ;;  %p436_p5 = pneg %p682_p0 }
  0x1b   : > { %s439_s16 = scalar_lea.hbm %s820_s0, 256  ;;  %p440_p4 = scmp.lt.u32.totalorder %s674_s30, %s820_s0 }
  0x1c   : > { %p437_p6 = pnand %p436_p5, %p435_p3  ;;  %p441_p10 = scmp.lt.u32.totalorder %s439_s16, %s434_s7 }
  0x1d   : > { %p443_p12 = scmp.lt.u32.totalorder %s434_s7, %s674_s30 }
  0x1e   : > { %p438_p7 = pneg %p437_p6  ;;  %p442_p13 = por %p441_p10, %p440_p4 }
  0x20   : > { %p444_p1 = por %p443_p12, %p442_p13 }
  0x22   : > { %p445_p2 = pnand %p444_p1, %p438_p7 }
  0x24   : > { %448 = shalt.err (!%p445_p2)
}
  0x25   : > { %s449_s20 = scalar_lea.vmem %s678_s4, 128  ;;  %s582_s28 = smov [#allocation2]  }
  0x26   : > { %p450_p3 = scmp.ne.s32.totalorder %s678_s4, %s449_s20  ;;  %s454_s29 = sshll.u32 %s582_s28, 4  ;;  %s455_s29 = int_to_ptr.vmem [resolvable:$false] %s454_s29 }
  0x27   : > { %s456_s3 = scalar_lea.vmem %s455_s29, 256  ;;  %p457_p9 = scmp.lt.s32.totalorder %s678_s4, %s455_s29 }
  0x28   : > { %p452_p6 = pnand %p450_p3, %p436_p5  ;;  %p458_p4 = scmp.lt.s32.totalorder %s456_s3, %s449_s20 }
  0x2a   : > { %p453_p11 = pneg %p452_p6  ;;  %p459_p10 = por %p458_p4, %p457_p9 }
  0x2c   : > { %p460_p12 = pnand %p459_p10, %p453_p11 }
  0x2e   : > { %463 = shalt.err (!%p460_p12)
}
  0x2f   : > { %375 = dma.hbm_to_vmem [thread:$0]  (!%p682_p0), %s674_s30, 128, %s678_s4, %s134_s6  }
  0x30   : > { %p830_p1 = scmp.lt.s32.totalorder %s580_s14, 3  ;;  %p831_p2 = scmp.ge.s32.totalorder %s580_s14, 1 }
  0x31   : > { %s727_s16 = scalar_lea.hbm %s821_s1, %s355_s27  ;;  %s156_s18 = scalar_lea.vmem [#allocation5], %s354_s26 }
  0x32   : > { %p718_p7 = pnand %p831_p2, %p830_p1  ;;  %s164_s19 = sshll.u32 %s156_s18, 4  ;;  %s165_s19 = int_to_ptr.vmem [resolvable:$true] %s164_s19 }
  0x33   : > { %s153_s30 = scalar_lea.sflag [#allocation6], %s665_s25  ;;  %s464_s4 = scalar_lea.hbm %s727_s16, 128 }
  0x34   : > { %s832_s7 = scalar_select %p718_p7, 1, 0 }
  0x35   : > { %p465_p9 = scmp.ne.s32.totalorder %s727_s16, %s464_s4  ;;  %s469_s27 = scalar_lea.hbm %s821_s1, 256 }
  0x36   : > { %p470_p3 = scmp.lt.u32.totalorder %s727_s16, %s821_s1  ;;  %p471_p6 = scmp.lt.u32.totalorder %s469_s27, %s464_s4 }
  0x37   : > { %p467_p11 = pnand %p465_p9, %p436_p5  ;;  %p473_p10 = scmp.lt.u32.totalorder %s464_s4, %s727_s16 }
  0x38   : > { %p472_p4 = por %p471_p6, %p470_p3 }
  0x39   : > { %p468_p13 = pneg %p467_p11 }
  0x3a   : > { %p474_p12 = por %p473_p10, %p472_p4 }
  0x3c   : > { %p475_p1 = pnand %p474_p12, %p468_p13 }
  0x3e   : > { %478 = shalt.err (!%p475_p1)
}
  0x3f   : > { %s479_s25 = scalar_lea.vmem %s165_s19, 128  ;;  %s583_s26 = smov [#allocation5]  }
  0x40   : > { %p480_p2 = scmp.ne.s32.totalorder %s165_s19, %s479_s25  ;;  %s484_s3 = sshll.u32 %s583_s26, 4  ;;  %s485_s3 = int_to_ptr.vmem [resolvable:$false] %s484_s3 }
  0x41   : > { %s486_s8 = scalar_lea.vmem %s485_s3, 256  ;;  %p487_p8 = scmp.lt.s32.totalorder %s165_s19, %s485_s3 }
  0x42   : > { %p482_p9 = pnand %p480_p2, %p436_p5  ;;  %p488_p7 = scmp.lt.s32.totalorder %s486_s8, %s479_s25 }
  0x44   : > { %p483_p11 = pneg %p482_p9  ;;  %p489_p3 = por %p488_p7, %p487_p8 }
  0x46   : > { %p490_p6 = pnand %p489_p3, %p483_p11 }
  0x48   : > { %493 = shalt.err (!%p490_p6)
}
  0x49   : > { %378 = dma.hbm_to_vmem [thread:$0]  (!%p682_p0), %s727_s16, 128, %s165_s19, %s153_s30  }
  0x4a   : > { %p833_p13 = scmp.ne.s32.totalorder %s832_s7, 0 }
  0x4b   : > { %s754_s15 = sand.u32 (!%p833_p13), 1, %s564_s10   ;;  %p834_p5 = scmp.ne.s32.totalorder (!%p833_p13), %s826_s21, 0 }
  0x4c   : > { %173 = sbr.rel (%p833_p13) target bundleno = 112 (0x70), region = 28  ;;  %s359_s18 = sshll.u32 (!%p833_p13), %s754_s15, 3 }
  0x4d   : > { %s176_s4 = scalar_lea.sflag (!%p833_p13), [#allocation3], %s754_s15  ;;  %s179_s6 = scalar_lea.vmem (!%p833_p13), [#allocation2], %s359_s18 }
  0x53   : > { %547 = dma.done.wait (%p834_p5), %s176_s4, 128  }
  0x54   : > { %549 = vsyncadd (%p834_p5), %s176_s4, 4294967168  ;;  %s185_s5 = scalar_lea.sflag [#allocation6], %s754_s15  ;;  %s188_s16 = scalar_lea.vmem [#allocation5], %s359_s18 }
  0x55   : > { %551 = dma.done.wait (%p834_p5), %s185_s5, 128  }
  0x56   : > { %553 = vsyncadd (%p834_p5), %s185_s5, 4294967168  ;;  %v221_v0 = vld [vmem:[%s179_s6] sm:$0xff]  ;;  %v222_v1 = vld [vmem:[%s188_s16] sm:$0xff]  ;;  %s363_s7 = sshll.u32 %s572_s12, 7  ;;  %s213_s19 = scalar_lea.vmem [#allocation7], %s359_s18 }
  0x57   : > { %v223_v2 = vsub.f32 %v221_v0, %v222_v1  ;;  %v225_v3 = vsub.f32 10.0, %v221_v0  ;;  %vm227_vm0 = vcmp.lt.f32.partialorder %v222_v1, 10.0  ;;  %s247_s30 = sshll.u32 %s213_s19, 4  ;;  %s771_s28 = scalar_lea.hbm %s822_s2, %s363_s7  ;;  %s773_s30 = int_to_ptr.vmem [resolvable:$true] %s247_s30 }
  0x58   : > { %s234_s21 = scalar_lea.sflag [#allocation4], %s754_s15  ;;  %s494_s29 = scalar_lea.vmem %s773_s30, 128 }
  0x59   : > { %v224_v4 = vand.u32 2147483647, %v223_v2  ;;  %v226_v5 = vmax.f32 %v225_v3, 0.0  ;;  %p495_p8 = scmp.ne.s32.totalorder %s773_s30, %s494_s29  ;;  %p835_p0 = scmp.ne.s32.totalorder %s827_s22, 0 }
  0x5a   : > { %s584_s12 = smov [#allocation7]  }
  0x5b   : > { %v228_v6 = vsel %vm227_vm0, %v224_v4, %v226_v5  ;;  %p496_p7 = pnand %p495_p8, %p835_p0  ;;  %s498_s25 = sshll.u32 %s584_s12, 4  ;;  %s499_s25 = int_to_ptr.vmem [resolvable:$false] %s498_s25 }
  0x5c   : > { %232 = vst [vmem:[%s213_s19] sm:$0xff] %v228_v6  ;;  %s500_s26 = scalar_lea.vmem %s499_s25, 256  ;;  %p501_p10 = scmp.lt.s32.totalorder %s773_s30, %s499_s25 }
  0x5d   : > { %p497_p4 = pneg %p496_p7  ;;  %p502_p12 = scmp.lt.s32.totalorder %s500_s26, %s494_s29 }
  0x5f   : > { %p503_p1 = por %p502_p12, %p501_p10 }
  0x61   : > { %p504_p2 = pnand %p503_p1, %p497_p4 }
  0x63   : > { %507 = shalt.err (!%p504_p2)
}
  0x64   : > { %s508_s3 = scalar_lea.hbm %s771_s28, 128  ;;  %s512_s18 = scalar_lea.hbm %s822_s2, 256 }
  0x65   : > { %p509_p9 = scmp.ne.s32.totalorder %s771_s28, %s508_s3  ;;  %p513_p6 = scmp.lt.u32.totalorder %s771_s28, %s822_s2 }
  0x66   : > { %p514_p13 = scmp.lt.u32.totalorder %s512_s18, %s508_s3  ;;  %p516_p8 = scmp.lt.u32.totalorder %s508_s3, %s771_s28 }
  0x67   : > { %p510_p11 = pnand %p509_p9, %p835_p0 }
  0x68   : > { %p515_p5 = por %p514_p13, %p513_p6 }
  0x69   : > { %p511_p3 = pneg %p510_p11 }
  0x6a   : > { %p517_p7 = por %p516_p8, %p515_p5 }
  0x6c   : > { %p518_p4 = pnand %p517_p7, %p511_p3 }
  0x6e   : > { %521 = shalt.err (!%p518_p4)
}
  0x6f   : > { %370 = dma.vmem_to_hbm [thread:$0]  (%p835_p0), %s773_s30, 128, %s771_s28, %s234_s21  }
  0x70 PF: > { %s259_s5 = sand.u32 1, %s560_s9   ;;  %p836_p10 = scmp.ne.s32.totalorder %s828_s24, 0 }
  0x71   : > { %p837_p12 = scmp.ge.s32.totalorder %s580_s14, 2  ;;  %s260_s16 = scalar_lea.sflag [#allocation4], %s259_s5 }
  0x73   : > { %p380_p1 = pnand %p837_p12, %p836_p10 }
  0x75   : > { %555 = dma.done.wait (!%p380_p1), %s260_s16, 128  }
  0x76   : > { %557 = vsyncadd (!%p380_p1), %s260_s16, 4294967168  ;;  %s21_s14 = sadd.s32 1, %s580_s14   ;;  %s838_s9 = smov %s564_s10 }
  0x77   : > { %p18_p2 = scmp.ge.s32.totalorder %s21_s14, 4   ;;  %s839_s10 = smov %s568_s11 }
  0x78   : > { %s840_s11 = smov %s656_s23  ;;  %s841_s12 = smov %s576_s13 }
  0x79   : > { %s842_s13 = smov %s844_s17  ;;  %20 = sbr.rel (!%p18_p2) target bundleno = 8 (0x8), region = 90 }
  0x80   :  { %265 = vsyncpa [#allocation3], 1 }
  0x81   :  { %267 = vsyncpa [#allocation3 + $0x1], 1 }
  0x82   :  { %268 = vsyncpa [#allocation6], 1 }
  0x83   :  { %270 = vsyncpa [#allocation6 + $0x1], 1 }
  0x84   :  { %271 = vsyncpa [#allocation4], 1 }
  0x85   :  { %273 = vsyncpa [#allocation4 + $0x1], 1 }

</bundles_post_ra>
